<compile_context>
chip_gen: v6e
topology: v6e:2x2x1
jax: 0.10.0
libtpu: 0.0.40
codegen_flags: <defaults>
</compile_context>

<pallas_src>
import warnings

import numpy as np
import jax
import jax.numpy as jnp
from jax import lax
from jax.experimental import pallas as pl
from jax.experimental.pallas import tpu as pltpu


def _concrete_se(se):
    """Return the structuring element as a numpy array if it is concrete, else None."""
    try:
        return np.asarray(se).astype(np.float32)       # raises for tracers
    except Exception:
        return None


def _is_rank1(mask):
    """True if a boolean mask is an outer product of a row mask and a column mask."""
    rows = mask.any(axis=1)
    cols = mask.any(axis=0)
    return np.array_equal(mask, np.outer(rows, cols))


def _build_kernel(mode, se_np, kh, kw, pad, h, w, h_out, w_out, bn, prepad):
    """Build the kernel body.

    mode:
      "max"              concrete non-negative SE  -> max over positive taps (+ threshold)
      "weighted_static"  concrete SE with negatives -> baked-constant weighted sum + threshold
      "weighted_dynamic" tracer SE                  -> SE weights read from SMEM at runtime

    prepad=False: kernel([se_ref,] img_ref(bn,h,w), out_ref, pad_ref(bn,hp,wp) scratch)
    prepad=True : kernel([se_ref,] img_ref(bn,hp,wp) already zero-padded, out_ref)
    """
    hp, wp = h + 2 * pad, w + 2 * pad

    if mode == "max":
        pos = se_np > 0
        separable = _is_rank1(pos)
    elif mode == "weighted_static":
        nz = se_np != 0

    def compute(se_ref, src_ref, out_ref):
        # src_ref holds the zero-padded (bn, hp, wp) image block.
        if mode == "max":
            if not pos.any():
                out_ref[...] = jnp.zeros_like(out_ref)
                return
            if separable:
                # Separable (rank-1) positive-tap mask: column pass then row pass,
                # kh + kw slices instead of kh * kw.
                cols = [v for v in range(kw) if pos[:, v].any()]
                rows = [u for u in range(kh) if pos[u, :].any()]
                colmax = src_ref[:, :, cols[0]:cols[0] + w_out]
                for v in cols[1:]:
                    colmax = jnp.maximum(colmax, src_ref[:, :, v:v + w_out])
                acc = colmax[:, rows[0]:rows[0] + h_out, :]
                for u in rows[1:]:
                    acc = jnp.maximum(acc, colmax[:, u:u + h_out, :])
            else:
                taps = [(u, v) for u in range(kh) for v in range(kw) if pos[u, v]]
                u0, v0 = taps[0]
                acc = src_ref[:, u0:u0 + h_out, v0:v0 + w_out]
                for u, v in taps[1:]:
                    acc = jnp.maximum(acc, src_ref[:, u:u + h_out, v:v + w_out])
            out_ref[...] = jnp.where(acc > 0.0, 1.0, 0.0).astype(out_ref.dtype)
        elif mode == "weighted_static":
            taps = [(u, v) for u in range(kh) for v in range(kw) if nz[u, v]]
            if not taps:
                out_ref[...] = jnp.zeros_like(out_ref)
                return
            u0, v0 = taps[0]
            acc = float(se_np[u0, v0]) * src_ref[:, u0:u0 + h_out, v0:v0 + w_out]
            for u, v in taps[1:]:
                acc = acc + float(se_np[u, v]) * src_ref[:, u:u + h_out, v:v + w_out]
            out_ref[...] = jnp.where(acc > 0.0, 1.0, 0.0).astype(out_ref.dtype)
        else:  # "weighted_dynamic": SE values read as SMEM scalars at runtime.
            acc = jnp.zeros((bn, h_out, w_out), jnp.float32)
            for u in range(kh):
                for v in range(kw):
                    acc = acc + se_ref[u, v] * src_ref[:, u:u + h_out, v:v + w_out]
            out_ref[...] = jnp.where(acc > 0.0, 1.0, 0.0).astype(out_ref.dtype)

    if prepad:
        if mode == "weighted_dynamic":
            def kernel(se_ref, img_ref, out_ref):
                compute(se_ref, img_ref, out_ref)
        else:
            def kernel(img_ref, out_ref):
                compute(None, img_ref, out_ref)
        return kernel

    def body(se_ref, img_ref, out_ref, pad_ref):
        # Zero only the halo (not the whole scratch); the interior is fully overwritten
        # by the DMA below every step.
        if pad > 0:
            pad_ref[:, 0:pad, :] = jnp.zeros((bn, pad, wp), jnp.float32)
            pad_ref[:, pad + h:hp, :] = jnp.zeros((bn, pad, wp), jnp.float32)
            pad_ref[:, :, 0:pad] = jnp.zeros((bn, hp, pad), jnp.float32)
            pad_ref[:, :, pad + w:wp] = jnp.zeros((bn, hp, pad), jnp.float32)
        # DMA the image block into the scratch interior (off the VLIW store slot).
        pltpu.sync_copy(img_ref, pad_ref.at[:, pad:pad + h, pad:pad + w])
        compute(se_ref, pad_ref, out_ref)

    if mode == "weighted_dynamic":
        def kernel(se_ref, img_ref, out_ref, pad_ref):
            body(se_ref, img_ref, out_ref, pad_ref)
    else:
        def kernel(img_ref, out_ref, pad_ref):
            body(None, img_ref, out_ref, pad_ref)
    return kernel


def dilation(img, structuring_element):
    """img: (N, 1, H, W) or (N, H, W) float32 binary image; structuring_element: (kh, kw)."""
    if img.ndim == 3:
        img = img[None]
    if img.ndim != 4 or img.shape[1] != 1:
        raise ValueError("expected (N, 1, H, W) single-channel input")
    n, _, h, w = img.shape
    kh, kw = structuring_element.shape

    # Faithful to the PyTorch code: BOTH spatial pads use se_shape[2]//2 == kh//2 (intentional).
    pad = kh // 2
    hp, wp = h + 2 * pad, w + 2 * pad
    h_out = hp - kh + 1
    w_out = wp - kw + 1

    x = img[:, 0].astype(jnp.float32)                        # (N, H, W)
    se_np = _concrete_se(structuring_element)
    if se_np is None:
        mode = "weighted_dynamic"
    elif (se_np < 0).any():
        mode = "weighted_static"
    else:
        mode = "max"

    # --- Generation-aware block sizing -------------------------------------------------
    try:
        info = pltpu.get_tpu_info()
        vmem_phys = int(getattr(info, "vmem_capacity_bytes", 64 << 20))
    except Exception:
        vmem_phys = 64 << 20                                 # conservative (v7x-safe) default
    # Keep the working set well under physical VMEM (v7x: 64 MiB; v5e/v6e: 128 MiB).
    budget = min(48 << 20, int(vmem_phys * 0.6))

    # Per-image VMEM: double-buffered input + output blocks + the padded scratch.
    per_img_bytes = 4 * (2 * h * w + 2 * h_out * w_out + hp * wp)
    # Keep >=2 (up to 4) grid steps when n > 1 so v7x's two TensorCores can shard the
    # "parallel" axis and DMA/compute can pipeline.
    steps_target = min(n, 4) if n > 1 else 1
    bn_cap = max(1, min(n, budget // max(per_img_bytes, 1), pl.cdiv(n, steps_target)))
    bn = 1
    for d in range(int(bn_cap), 0, -1):
        if n % d == 0:
            bn = d
            break
    grid = (n // bn,)
    # TODO(synk): H-tiled variant with a (kh-1)-row halo for single images whose
    #             per_img_bytes exceeds the budget (currently they become one block).

    vmem_limit = min(int(vmem_phys * 0.8),
                     max(32 << 20, bn * per_img_bytes + (8 << 20)))

    cost = pl.CostEstimate(
        flops=int(2 * kh * kw * n * h_out * w_out),
        transcendentals=0,
        bytes_accessed=int(4 * (n * h * w + n * h_out * w_out)),
    )

    def run(prepad):
        kernel = _build_kernel(mode, se_np, kh, kw, pad, h, w, h_out, w_out, bn, prepad)
        if prepad:
            src = jnp.pad(x, ((0, 0), (pad, pad), (pad, pad)))
            img_spec = pl.BlockSpec((bn, hp, wp), lambda i: (i, 0, 0))
            scratch = []
        else:
            src = x
            img_spec = pl.BlockSpec((bn, h, w), lambda i: (i, 0, 0))
            scratch = [pltpu.VMEM((bn, hp, wp), jnp.float32)]

        in_specs = [img_spec]
        args = [src]
        if mode == "weighted_dynamic":
            in_specs = [pl.BlockSpec(memory_space=pltpu.SMEM)] + in_specs
            args = [structuring_element.astype(jnp.float32)] + args

        return pl.pallas_call(
            kernel,
            out_shape=jax.ShapeDtypeStruct((n, h_out, w_out), jnp.float32),
            grid_spec=pltpu.PrefetchScalarGridSpec(
                num_scalar_prefetch=0,
                grid=grid,
                in_specs=in_specs,
                out_specs=pl.BlockSpec((bn, h_out, w_out), lambda i: (i, 0, 0)),
                scratch_shapes=scratch,
            ),
            compiler_params=pltpu.CompilerParams(
                dimension_semantics=("parallel",),
                vmem_limit_bytes=int(vmem_limit),
            ),
            cost_estimate=cost,
        )(*args)

    if pad == 0:
        # No halo needed; skip the scratch entirely (jnp.pad with 0 widths is a no-op).
        out = run(prepad=True)
    else:
        try:
            out = run(prepad=False)   # preferred: halo built in-kernel, no extra HBM round trip
        except Exception as e:        # surfaced fallback: pre-pad in XLA (~2x HBM traffic)
            warnings.warn(
                "dilation: in-kernel halo path failed "
                f"({type(e).__name__}: {e}); falling back to wrapper-side padding.")
            out = run(prepad=True)

    return out[:, None]               # (N, 1, H_out, W_out)


def _reference(img, se):
    """Pure-JAX reference: conv2d (cross-correlation, pad=(kh//2, kh//2)) + threshold, NCHW."""
    kh, _ = se.shape
    pad = kh // 2
    conv = lax.conv_general_dilated(
        img.astype(jnp.float32),
        se[None, None].astype(jnp.float32),
        window_strides=(1, 1),
        padding=((pad, pad), (pad, pad)),
        dimension_numbers=("NCHW", "OIHW", "NCHW"),
    )
    return jnp.where(conv > 0.0, 1.0, 0.0)


if __name__ == "__main__":
    key = jax.random.PRNGKey(0)
    N, C, H, W = 2, 1, 16, 16

    # Deterministic binary input image.
    img = (jax.random.uniform(key, (N, C, H, W)) < 0.15).astype(jnp.float32)

    # 1) Standard case: 3x3 all-ones structuring element (separable max fast path).
    se_ones = jnp.ones((3, 3), jnp.float32)
    out = jax.block_until_ready(dilation(img, se_ones))
    assert out.shape == (N, C, H, W), out.shape      # holds for odd square SEs
    assert jnp.allclose(out, _reference(img, se_ones)), "mismatch (ones SE)"

    # 2) Cross-shaped SE: non-separable positive-tap max path, zero taps skipped.
    se_cross = jnp.array([[0., 1., 0.], [1., 1., 1.], [0., 1., 0.]], jnp.float32)
    out2 = jax.block_until_ready(dilation(img, se_cross))
    assert jnp.allclose(out2, _reference(img, se_cross)), "mismatch (cross SE)"

    # 3) SE with a negative weight -> baked-constant weighted-sum + threshold path.
    se_neg = jnp.array([[1., 1., 1.], [1., -1., 1.], [1., 1., 1.]], jnp.float32)
    out3 = jax.block_until_ready(dilation(img, se_neg))
    assert jnp.allclose(out3, _reference(img, se_neg)), "mismatch (negative-weight SE)"

    print("KERNEL_OK")
</pallas_src>

<mosaic_0001>
module attributes {stable_mosaic.version = 11 : i64} {
  func.func @kernel(%arg0: i32, %arg1: memref<1x16x16xf32, #tpu.memory_space<vmem>>, %arg2: memref<1x16x16xf32, #tpu.memory_space<vmem>>, %arg3: memref<1x18x18xf32, #tpu.memory_space<vmem>>) attributes {dimension_semantics = [#tpu.dimension_semantics<parallel>], iteration_bounds = array<i64: 2>, scalar_prefetch = 0 : i64, scratch_operands = 1 : i64, tpu.core_type = #tpu.core_type<tc>, window_params = [{transform_indices = @transform_0, window_bounds = array<i64: 1, 16, 16>}, {transform_indices = @transform_1, window_bounds = array<i64: 1, 16, 16>}]} {
    %cst = arith.constant 0.000000e+00 : f32
    %0 = vector.broadcast %cst : f32 to vector<1x1x18xf32>
    %c0 = arith.constant 0 : index
    %c0_0 = arith.constant 0 : index
    %c0_1 = arith.constant 0 : index
    %1 = vector.load %arg3[%c0, %c0_0, %c0_1] : memref<1x18x18xf32, #tpu.memory_space<vmem>>, vector<1x1x18xf32>
    tpu.vector_store %arg3[%c0, %c0_0, %c0_1], %0 {strides = array<i32>} : memref<1x18x18xf32, #tpu.memory_space<vmem>>, vector<1x1x18xf32>,
    %cst_2 = arith.constant 0.000000e+00 : f32
    %2 = vector.broadcast %cst_2 : f32 to vector<1x1x18xf32>
    %c0_3 = arith.constant 0 : index
    %c17 = arith.constant 17 : index
    %c0_4 = arith.constant 0 : index
    %3 = vector.load %arg3[%c0_3, %c17, %c0_4] : memref<1x18x18xf32, #tpu.memory_space<vmem>>, vector<1x1x18xf32>
    tpu.vector_store %arg3[%c0_3, %c17, %c0_4], %2 {strides = array<i32>} : memref<1x18x18xf32, #tpu.memory_space<vmem>>, vector<1x1x18xf32>,
    %cst_5 = arith.constant 0.000000e+00 : f32
    %4 = vector.broadcast %cst_5 : f32 to vector<1x18x1xf32>
    %c0_6 = arith.constant 0 : index
    %c0_7 = arith.constant 0 : index
    %c0_8 = arith.constant 0 : index
    %5 = vector.load %arg3[%c0_6, %c0_7, %c0_8] : memref<1x18x18xf32, #tpu.memory_space<vmem>>, vector<1x18x1xf32>
    tpu.vector_store %arg3[%c0_6, %c0_7, %c0_8], %4 {strides = array<i32>} : memref<1x18x18xf32, #tpu.memory_space<vmem>>, vector<1x18x1xf32>,
    %cst_9 = arith.constant 0.000000e+00 : f32
    %6 = vector.broadcast %cst_9 : f32 to vector<1x18x1xf32>
    %c0_10 = arith.constant 0 : index
    %c0_11 = arith.constant 0 : index
    %c17_12 = arith.constant 17 : index
    %7 = vector.load %arg3[%c0_10, %c0_11, %c17_12] : memref<1x18x18xf32, #tpu.memory_space<vmem>>, vector<1x18x1xf32>
    tpu.vector_store %arg3[%c0_10, %c0_11, %c17_12], %6 {strides = array<i32>} : memref<1x18x18xf32, #tpu.memory_space<vmem>>, vector<1x18x1xf32>,
    "tpu.region"() ({
      %24 = tpu.sem_alloc : memref<!tpu.dma_semaphore, #tpu.memory_space<semaphore_mem>>
      %c0_i32 = arith.constant 0 : i32
      %c1_i32 = arith.constant 1 : i32
      %c1_i32_26 = arith.constant 1 : i32
      %25 = tpu.memref_slice %arg3[%c0_i32, %c1_i32, %c1_i32_26] : memref<1x18x18xf32, #tpu.memory_space<vmem>> -> memref<1x16x16xf32, #tpu.memory_space<vmem>>
      tpu.enqueue_dma source(%arg1 : memref<1x16x16xf32, #tpu.memory_space<vmem>>) target(%25 : memref<1x16x16xf32, #tpu.memory_space<vmem>>) target_semaphore(%24 : memref<!tpu.dma_semaphore, #tpu.memory_space<semaphore_mem>>)
      %c0_i32_27 = arith.constant 0 : i32
      %c1_i32_28 = arith.constant 1 : i32
      %c1_i32_29 = arith.constant 1 : i32
      %26 = tpu.memref_slice %arg3[%c0_i32_27, %c1_i32_28, %c1_i32_29] : memref<1x18x18xf32, #tpu.memory_space<vmem>> -> memref<1x16x16xf32, #tpu.memory_space<vmem>>
      tpu.wait_dma2 semaphore(%24 : memref<!tpu.dma_semaphore, #tpu.memory_space<semaphore_mem>>) src(%arg1 : memref<1x16x16xf32, #tpu.memory_space<vmem>>) dst(%26 : memref<1x16x16xf32, #tpu.memory_space<vmem>>)
      tpu.yield
    }) : () -> ()
    %c0_13 = arith.constant 0 : index
    %c0_14 = arith.constant 0 : index
    %c0_15 = arith.constant 0 : index
    %8 = vector.load %arg3[%c0_13, %c0_14, %c0_15] : memref<1x18x18xf32, #tpu.memory_space<vmem>>, vector<1x18x16xf32>
    %c0_16 = arith.constant 0 : index
    %c0_17 = arith.constant 0 : index
    %c1 = arith.constant 1 : index
    %9 = vector.load %arg3[%c0_16, %c0_17, %c1] : memref<1x18x18xf32, #tpu.memory_space<vmem>>, vector<1x18x16xf32>
    %10 = arith.maximumf %8, %9 : vector<1x18x16xf32>
    %c0_18 = arith.constant 0 : index
    %c0_19 = arith.constant 0 : index
    %c2 = arith.constant 2 : index
    %11 = vector.load %arg3[%c0_18, %c0_19, %c2] : memref<1x18x18xf32, #tpu.memory_space<vmem>>, vector<1x18x16xf32>
    %12 = arith.maximumf %10, %11 : vector<1x18x16xf32>
    %13 = vector.extract_strided_slice %12 {offsets = [0, 0, 0], sizes = [1, 16, 16], strides = [1, 1, 1]} : vector<1x18x16xf32> to vector<1x16x16xf32>
    %14 = vector.extract_strided_slice %12 {offsets = [0, 1, 0], sizes = [1, 16, 16], strides = [1, 1, 1]} : vector<1x18x16xf32> to vector<1x16x16xf32>
    %15 = arith.maximumf %13, %14 : vector<1x16x16xf32>
    %16 = vector.extract_strided_slice %12 {offsets = [0, 2, 0], sizes = [1, 16, 16], strides = [1, 1, 1]} : vector<1x18x16xf32> to vector<1x16x16xf32>
    %17 = arith.maximumf %15, %16 : vector<1x16x16xf32>
    %cst_20 = arith.constant 0.000000e+00 : f32
    %18 = vector.broadcast %cst_20 : f32 to vector<1x16x16xf32>
    %19 = arith.cmpf ogt, %17, %18 : vector<1x16x16xf32>
    %cst_21 = arith.constant 1.000000e+00 : f32
    %cst_22 = arith.constant 0.000000e+00 : f32
    %20 = vector.broadcast %cst_21 : f32 to vector<1x16x16xf32>
    %21 = vector.broadcast %cst_22 : f32 to vector<1x16x16xf32>
    %22 = arith.select %19, %20, %21 : vector<1x16x16xi1>, vector<1x16x16xf32>
    %c0_23 = arith.constant 0 : index
    %c0_24 = arith.constant 0 : index
    %c0_25 = arith.constant 0 : index
    %23 = vector.load %arg2[%c0_23, %c0_24, %c0_25] : memref<1x16x16xf32, #tpu.memory_space<vmem>>, vector<1x16x16xf32>
    tpu.vector_store %arg2[%c0_23, %c0_24, %c0_25], %22 {strides = array<i32>} : memref<1x16x16xf32, #tpu.memory_space<vmem>>, vector<1x16x16xf32>,
    return
  }
  func.func @transform_0(%arg0: i32) -> (i32, i32, i32) {
    %c0_i32 = arith.constant 0 : i32
    %c0_i32_0 = arith.constant 0 : i32
    %c0_i32_1 = arith.constant 0 : i32
    return %arg0, %c0_i32, %c0_i32_0 : i32, i32, i32
  }
  func.func @transform_1(%arg0: i32) -> (i32, i32, i32) {
    %c0_i32 = arith.constant 0 : i32
    %c0_i32_0 = arith.constant 0 : i32
    %c0_i32_1 = arith.constant 0 : i32
    return %arg0, %c0_i32, %c0_i32_0 : i32, i32, i32
  }
}

module attributes {stable_mosaic.version = 11 : i64} {
  func.func @kernel(%arg0: i32, %arg1: memref<1x18x18xf32, #tpu.memory_space<vmem>>, %arg2: memref<1x16x16xf32, #tpu.memory_space<vmem>>) attributes {dimension_semantics = [#tpu.dimension_semantics<parallel>], iteration_bounds = array<i64: 2>, scalar_prefetch = 0 : i64, scratch_operands = 0 : i64, tpu.core_type = #tpu.core_type<tc>, window_params = [{transform_indices = @transform_0, window_bounds = array<i64: 1, 18, 18>}, {transform_indices = @transform_1, window_bounds = array<i64: 1, 16, 16>}]} {
    %c0 = arith.constant 0 : index
    %c0_0 = arith.constant 0 : index
    %c0_1 = arith.constant 0 : index
    %0 = vector.load %arg1[%c0, %c0_0, %c0_1] : memref<1x18x18xf32, #tpu.memory_space<vmem>>, vector<1x18x16xf32>
    %c0_2 = arith.constant 0 : index
    %c0_3 = arith.constant 0 : index
    %c1 = arith.constant 1 : index
    %1 = vector.load %arg1[%c0_2, %c0_3, %c1] : memref<1x18x18xf32, #tpu.memory_space<vmem>>, vector<1x18x16xf32>
    %2 = arith.maximumf %0, %1 : vector<1x18x16xf32>
    %c0_4 = arith.constant 0 : index
    %c0_5 = arith.constant 0 : index
    %c2 = arith.constant 2 : index
    %3 = vector.load %arg1[%c0_4, %c0_5, %c2] : memref<1x18x18xf32, #tpu.memory_space<vmem>>, vector<1x18x16xf32>
    %4 = arith.maximumf %2, %3 : vector<1x18x16xf32>
    %5 = vector.extract_strided_slice %4 {offsets = [0, 0, 0], sizes = [1, 16, 16], strides = [1, 1, 1]} : vector<1x18x16xf32> to vector<1x16x16xf32>
    %6 = vector.extract_strided_slice %4 {offsets = [0, 1, 0], sizes = [1, 16, 16], strides = [1, 1, 1]} : vector<1x18x16xf32> to vector<1x16x16xf32>
    %7 = arith.maximumf %5, %6 : vector<1x16x16xf32>
    %8 = vector.extract_strided_slice %4 {offsets = [0, 2, 0], sizes = [1, 16, 16], strides = [1, 1, 1]} : vector<1x18x16xf32> to vector<1x16x16xf32>
    %9 = arith.maximumf %7, %8 : vector<1x16x16xf32>
    %cst = arith.constant 0.000000e+00 : f32
    %10 = vector.broadcast %cst : f32 to vector<1x16x16xf32>
    %11 = arith.cmpf ogt, %9, %10 : vector<1x16x16xf32>
    %cst_6 = arith.constant 1.000000e+00 : f32
    %cst_7 = arith.constant 0.000000e+00 : f32
    %12 = vector.broadcast %cst_6 : f32 to vector<1x16x16xf32>
    %13 = vector.broadcast %cst_7 : f32 to vector<1x16x16xf32>
    %14 = arith.select %11, %12, %13 : vector<1x16x16xi1>, vector<1x16x16xf32>
    %c0_8 = arith.constant 0 : index
    %c0_9 = arith.constant 0 : index
    %c0_10 = arith.constant 0 : index
    %15 = vector.load %arg2[%c0_8, %c0_9, %c0_10] : memref<1x16x16xf32, #tpu.memory_space<vmem>>, vector<1x16x16xf32>
    tpu.vector_store %arg2[%c0_8, %c0_9, %c0_10], %14 {strides = array<i32>} : memref<1x16x16xf32, #tpu.memory_space<vmem>>, vector<1x16x16xf32>,
    return
  }
  func.func @transform_0(%arg0: i32) -> (i32, i32, i32) {
    %c0_i32 = arith.constant 0 : i32
    %c0_i32_0 = arith.constant 0 : i32
    %c0_i32_1 = arith.constant 0 : i32
    return %arg0, %c0_i32, %c0_i32_0 : i32, i32, i32
  }
  func.func @transform_1(%arg0: i32) -> (i32, i32, i32) {
    %c0_i32 = arith.constant 0 : i32
    %c0_i32_0 = arith.constant 0 : i32
    %c0_i32_1 = arith.constant 0 : i32
    return %arg0, %c0_i32, %c0_i32_0 : i32, i32, i32
  }
}

</mosaic_0001>

<bundles_post_ra>
// kernel: tpu_custom_call.1
= control target key start
LH: loop header
LB: loop body
LE: loop exit
PB: predicated region body
PF: predicated region fallthrough
CT: control target
= control target key end

     0   :  { %6 = vsyncpa [#allocation3], 0  ;;  %s492_s0 = inlined_call_operand.vmem [shape: f32[2,18,18], index: 0, kind: input, shape index: {}]   ;;  %s493_s1 = inlined_call_operand.hbm [shape: f32[2,16,16], index: 1, kind: output, shape index: {}]  }
   0x1   :  { %8 = vsyncpa [#allocation3 + $0x1], 0  ;;  %s386_s6 = smov 0   ;;  %s388_s7 = smov 0  }
   0x2   :  { %s390_s8 = smov 0   ;;  %s392_s9 = smov 0  }
   0x3 LB: > { %s407_s10 = sadd.s32 4294967295, %s368_s9   ;;  %s251_s11 = sadd.s32 4294967294, %s368_s9   ;;  %s368_s9 = sphi %s392_s9, %s499_s9   ;;  %s364_s8 = sphi %s390_s8, %s498_s8   ;;  %s360_s7 = sphi %s388_s7, %s497_s7   ;;  %s356_s6 = sphi %s386_s6, %s496_s6  }
   0x4   : > { %s411_s12 = sadd.s32 1, %s368_s9   ;;  %s47_s13 = sadd.s32 1, %s364_s8 }
   0x5   : > { %s44_s14 = ssub.s32 %s368_s9, %s411_s12  ;;  %p57_p0 = scmp.ne.s32.totalorder %s364_s8, %s360_s7 }
   0x6   : > { %p45_p1 = scmp.eq.s32.totalorder %s44_s14, 0  ;;  %p58_p2 = scmp.eq.s32.totalorder %s407_s10, 1 }
   0x7   : > { %p63_p3 = scmp.ne.s32.totalorder %s360_s7, %s356_s6  ;;  %p64_p4 = scmp.eq.s32.totalorder %s251_s11, 1 }
   0x8   : > { %s422_s15 = scalar_select %p45_p1, %s364_s8, %s47_s13  }
   0x9   : > { %p424_p5 = por %p58_p2, %p57_p0  ;;  %p428_p6 = por %p64_p4, %p63_p3 }
   0xa   : > { %p254_p7 = scmp.ge.s32.totalorder %s368_s9, 1  ;;  %p90_p8 = scmp.lt.s32.totalorder %s368_s9, 3 }
   0xc   : > { %p91_p9 = pnand %p254_p7, %p90_p8 }
   0xd   : > { %p110_p10 = scmp.lt.s32.totalorder (!%p91_p9), %s407_s10, 1  ;;  %s370_s23 = smov (!%p91_p9), 127  }
   0xe   : > { %94 = sbr.rel (%p91_p9) target bundleno = 173 (0xad), region = 24  ;;  %s371_s24 = smov (!%p91_p9), 126  }
   0xf   : > { %s107_s25 = sand.u32 (!%p91_p9), 1, %s360_s7   ;;  %s262_s27 = sshll.u32 (!%p91_p9), %s407_s10, 8 }
  0x10   : > { %s255_s26 = sshll.u32 (!%p91_p9), %s107_s25, 4  ;;  %s446_s3 = scalar_lea.hbm (!%p91_p9), %s493_s1, %s262_s27 }
  0x11   : > { %s109_s28 = scalar_lea.vmem (!%p91_p9), [#allocation2], %s255_s26  ;;  %s452_s4 = scalar_lea.sflag (!%p91_p9), [#allocation3], %s107_s25 }
  0x12   : > { %s189_s29 = sshll.u32 (!%p91_p9), %s109_s28, 4  ;;  %s448_s29 = int_to_ptr.vmem [resolvable:$true] %s189_s29 }
  0x13   : > { %s111_s18 = scalar_select %p110_p10, %s407_s10, 1  ;;  %vm148_vm0 = vcmask 1046528   ;;  %vm158_vm1 = vcmask 1045504   ;;  %vm172_vm2 = vcmask 130048   ;;  %v372_v29 = vmov 0.0  }
  0x14   : > { %s308_s5 = scalar_lea.vmem %s448_s29, 256  ;;  %s373_s10 = smov [#allocation2]  }
  0x15   : > { %s263_s19 = smul.u32 24, %s111_s18  ;;  %p309_p11 = scmp.ne.s32.totalorder %s448_s29, %s308_s5 }
  0x16   : > { %s312_s11 = sshll.u32 %s373_s10, 4  ;;  %s313_s11 = int_to_ptr.vmem [resolvable:$false] %s312_s11 }
  0x17   : > { %s114_s22 = scalar_lea.vmem %s492_s0, %s263_s19  ;;  %p310_p12 = pnand %p309_p11, %p424_p5 }
  0x18   : > { %v117_v0 = vld [vmem:[%s114_s22 + $0x10] sm:$0x3]  ;;  %v115_v1 = vld [vmem:[%s114_s22] sm:$0xff]  ;;  %v116_v2 = vld [vmem:[%s114_s22 + $0x8] sm:$0xff]  ;;  %s314_s13 = scalar_lea.vmem %s313_s11, 512  ;;  %p315_p0 = scmp.lt.s32.totalorder %s448_s29, %s313_s11 }
  0x19   : > { %125 = vrot.lane.b32.xlu1 %v117_v0, %s370_s23  ;;  %121 = vrot.lane.b32.xlu0 %v115_v1, %s370_s23  ;;  %p311_p13 = pneg %p310_p12  ;;  %p316_p1 = scmp.lt.s32.totalorder %s314_s13, %s308_s5 }
  0x1b   : > { %p317_p2 = por %p316_p1, %p315_p0 }
  0x1d   : > { %133 = vrot.lane.b32.xlu1 %v115_v1, %s371_s24  ;;  %123 = vrot.lane.b32.xlu0 %v116_v2, %s370_s23  ;;  %p318_p3 = pnand %p317_p2, %p311_p13 }
  0x21   : > { %137 = vrot.lane.b32.xlu1 %v117_v0, %s371_s24  ;;  %135 = vrot.lane.b32.xlu0 %v116_v2, %s371_s24 }
  0x8b   : > { %v126_v3 = vpop.permute.xlu1 %125  ;;  %v122_v4 = vpop.permute.xlu0 %121 }
  0x8c   : > { %v130_v5 = vmax.f32 %v115_v1, %v122_v4  ;;  %v132_v9 = vmax.f32 %v117_v0, %v126_v3 }
  0x8f   : > { %v134_v6 = vpop.permute.xlu1 %133  ;;  %v124_v7 = vpop.permute.xlu0 %123 }
  0x90   : > { %v142_v8 = vmax.f32 %v130_v5, %v134_v6  ;;  %v131_v10 = vmax.f32 %v116_v2, %v124_v7 }
  0x92   : > { %v149_v15 = vrot.slane %v142_v8, 1  ;;  %v159_v20 = vrot.slane %v142_v8, 2 }
  0x93   : > { %v138_v11 = vpop.permute.xlu1 %137  ;;  %v136_v12 = vpop.permute.xlu0 %135 }
  0x94   : > { %v144_v13 = vmax.f32 %v132_v9, %v138_v11  ;;  %v143_v14 = vmax.f32 %v131_v10, %v136_v12 }
  0x96   : > { %v152_v16 = vrot.slane %v144_v13, 1  ;;  %v162_v17 = vrot.slane %v144_v13, 2  ;;  %v150_v18 = vrot.slane %v143_v14, 1  ;;  %v160_v19 = vrot.slane %v143_v14, 2 }
  0x98   : > { %v151_v21 = vsel %vm148_vm0, %v149_v15, %v150_v18  ;;  %v153_v22 = vsel %vm148_vm0, %v150_v18, %v152_v16  ;;  %v161_v25 = vsel %vm158_vm1, %v159_v20, %v160_v19  ;;  %v163_v26 = vsel %vm158_vm1, %v160_v19, %v162_v17 }
  0x99   : > { %v156_v23 = vmax.f32 %v142_v8, %v151_v21  ;;  %v157_v24 = vmax.f32 %v143_v14, %v153_v22 }
  0x9b   : > { %v166_v27 = vmax.f32 %v156_v23, %v161_v25  ;;  %v167_v28 = vmax.f32 %v157_v24, %v163_v26 }
  0x9d   : > { %vm168_vm3 = vcmp.gt.f32.partialorder %v166_v27, 0.0  ;;  %vm169_vm4 = vcmp.gt.f32.partialorder %v167_v28, 0.0 }
  0x9e   : > { %v170_v30 = vsel %vm168_vm3, 1.0, %v372_v29  ;;  %v171_v31 = vsel %vm169_vm4, 1.0, %v372_v29 }
  0x9f   : > { %174 = vst.msk [vmem:[%s109_s28 + $0x8] sm:$0xff] %vm172_vm2, %v171_v31  ;;  %173 = vst.msk [vmem:[%s109_s28] sm:$0xff] %vm172_vm2, %v170_v30 }
  0xa0   : > { %321 = shalt.err (!%p318_p3)
}
  0xa1   : > { %s322_s14 = scalar_lea.hbm %s446_s3, 256  ;;  %s326_s20 = scalar_lea.hbm %s493_s1, 512 }
  0xa2   : > { %p323_p4 = scmp.ne.s32.totalorder %s446_s3, %s322_s14  ;;  %p327_p9 = scmp.lt.s32.totalorder %s446_s3, %s493_s1 }
  0xa3   : > { %p328_p10 = scmp.lt.s32.totalorder %s326_s20, %s322_s14 }
  0xa4   : > { %p324_p7 = pnand %p323_p4, %p424_p5 }
  0xa5   : > { %p329_p11 = por %p328_p10, %p327_p9 }
  0xa6   : > { %p325_p8 = pneg %p324_p7 }
  0xa8   : > { %p330_p12 = pnand %p329_p11, %p325_p8 }
  0xaa   : > { %333 = shalt.err (!%p330_p12)
}
  0xab   : > { %s374_s23 = smov 128   ;;  %s375_s24 = smov 8  }
  0xac   : > { %264 = dma.vmem_to_hbm [thread:$0]  (%p424_p5), %s448_s29, 256, %s446_s3, %s452_s4, %s374_s23, %s374_s23, %s375_s24  }
  0xad PF: > { %p270_p13 = scmp.ge.s32.totalorder %s368_s9, 2  ;;  %s204_s25 = sand.u32 1, %s356_s6  }
  0xae   : > { %s205_s26 = scalar_lea.sflag [#allocation3], %s204_s25 }
  0xaf   : > { %p267_p0 = pnand %p270_p13, %p428_p6 }
  0xb1   : > { %p268_p1 = pneg %p267_p0 }
  0xb3   : > { %351 = dma.done.wait (%p268_p1), %s205_s26, 256  }
  0xb4   : > { %353 = vsyncadd (%p268_p1), %s205_s26, 4294967040  ;;  %p11_p2 = scmp.ge.s32.totalorder %s411_s12, 4   ;;  %s496_s6 = smov %s360_s7 }
  0xb5   : > { %s497_s7 = smov %s364_s8  ;;  %s498_s8 = smov %s422_s15 }
  0xb6   : > { %s499_s9 = smov %s411_s12  ;;  %13 = sbr.rel (!%p11_p2) target bundleno = 3 (0x3), region = 59 }
  0xbb   :  { %210 = vsyncpa [#allocation3], 1 }
  0xbc   :  { %212 = vsyncpa [#allocation3 + $0x1], 1 }

</bundles_post_ra>
